<compile_context>
chip_gen: v5e
topology: v5e:2x2
jax: 0.10.0
libtpu: 0.0.40
codegen_flags: <defaults>
</compile_context>

<pallas_src>
import functools

import jax
import jax.numpy as jnp
from jax.experimental import pallas as pl
from jax.experimental.pallas import tpu as pltpu


def make_position_encoding(max_len: int, d_model: int, dtype=jnp.float32):
    """Builds P of shape (1, max_len, d_model), identical to the torch init."""
    pos = jnp.arange(max_len, dtype=jnp.float32)[:, None]                    # (L, 1)
    div = jnp.power(10000.0,
                    jnp.arange(0, d_model, 2, dtype=jnp.float32) / d_model)  # (D/2,)
    X = pos / div                                                            # (L, D/2)
    P = jnp.zeros((1, max_len, d_model), dtype)
    P = P.at[:, :, 0::2].set(jnp.sin(X).astype(dtype))
    P = P.at[:, :, 1::2].set(jnp.cos(X).astype(dtype))
    return P


def _hash_u32(x):
    # lowbias32-style finalizer: uniform uint32 bits from a counter. Pure VPU
    # integer ops (xor/shift/mul) — portable across TPU generations + interpret.
    x = x ^ (x >> 16)
    x = x * jnp.uint32(0x7FEB352D)
    x = x ^ (x >> 15)
    x = x * jnp.uint32(0x846CA68B)
    x = x ^ (x >> 16)
    return x


def _posenc_kernel(seed_ref, x_ref, p_ref, o_ref, *,
                   rate: float, tile_rows: int, lanes: int, rows_total: int):
    # x_ref / p_ref / o_ref are 2D (tile_rows, lanes); batch dim is squeezed.
    y = x_ref[...] + p_ref[...]

    if rate > 0.0:
        b = pl.program_id(0)
        rt = pl.program_id(1)
        # Global flat element index (unique per element, independent of tiling).
        row_base = b * rows_total + rt * tile_rows
        r = jax.lax.broadcasted_iota(jnp.int32, y.shape, 0) + row_base
        c = jax.lax.broadcasted_iota(jnp.int32, y.shape, 1)
        lin = (r * lanes + c).astype(jnp.uint32)
        seed_u = seed_ref[0].astype(jnp.uint32) * jnp.uint32(0x9E3779B9)
        bits = _hash_u32(lin + seed_u)                      # uniform uint32
        threshold = jnp.uint32(min(int(rate * (2 ** 32)), 2 ** 32 - 1))
        keep = bits >= threshold                            # P(keep) = 1 - rate
        scale = 1.0 / (1.0 - rate)
        y = y * jnp.where(keep,
                          jnp.asarray(scale, y.dtype),
                          jnp.asarray(0.0, y.dtype))

    o_ref[...] = y


def _choose_layout(S: int, D: int):
    """Pick a lane-dense 2D view (rows, lanes) of one (S, D) slab."""
    if D % 128 == 0:
        return S, D
    if (S * D) % 128 == 0:
        return (S * D) // 128, 128
    return S, D   # fallback: keep original layout (correctness over density)


def _choose_tile_rows(rows: int, lanes: int, itemsize: int,
                      target_bytes: int = 1 << 20):
    """Largest row-tile with ~1 MiB per buffer; multiple of 8 (or full extent).
    Small enough that double-buffered x+P+out stays well under v7x's 64 MiB."""
    if rows <= 8:
        return rows
    t = target_bytes // max(1, lanes * itemsize)
    t = min(rows, max(8, t))
    t = (t // 8) * 8
    return rows if t >= rows else max(8, t)


def position_encoding_forward(x, P, *, dropout_rate: float = 0.0, seed: int = 0,
                              training: bool = False):
    """x: (B, S, D). Returns x + P[:, :S, :], with inverted dropout if training."""
    B, S, D = x.shape
    assert S <= P.shape[1] and D == P.shape[2]
    rate = float(dropout_rate) if training else 0.0

    rows, lanes = _choose_layout(S, D)
    x2 = x.reshape(B, rows, lanes)                          # lane-dense view
    p2 = P[0, :S, :].astype(x.dtype).reshape(rows, lanes)   # same view of P

    tile_rows = _choose_tile_rows(rows, lanes, x.dtype.itemsize)
    grid_r = pl.cdiv(rows, tile_rows)
    seed_arr = jnp.array([seed], dtype=jnp.int32)

    kernel = functools.partial(_posenc_kernel, rate=rate, tile_rows=tile_rows,
                               lanes=lanes, rows_total=rows)
    out = pl.pallas_call(
        kernel,
        out_shape=jax.ShapeDtypeStruct((B, rows, lanes), x.dtype),
        grid_spec=pltpu.PrefetchScalarGridSpec(
            num_scalar_prefetch=1,
            grid=(B, grid_r),
            in_specs=[
                pl.BlockSpec((pl.Squeezed(), tile_rows, lanes),
                             lambda b, r, seed: (b, r, 0)),
                pl.BlockSpec((tile_rows, lanes),
                             lambda b, r, seed: (r, 0)),
            ],
            out_specs=pl.BlockSpec((pl.Squeezed(), tile_rows, lanes),
                                   lambda b, r, seed: (b, r, 0)),
        ),
        compiler_params=pltpu.CompilerParams(
            dimension_semantics=("parallel", "parallel")),
    )(seed_arr, x2, p2)
    return out.reshape(B, S, D)


if __name__ == "__main__":
    B, S, D = 2, 8, 32
    MAX_LEN = 100
    DROPOUT = 0.1

    key = jax.random.PRNGKey(0)
    x = jax.random.normal(key, (B, S, D), dtype=jnp.float32)

    P = make_position_encoding(MAX_LEN, D)
    ref = x + P[:, :S, :]

    # Eval-mode forward (dropout is identity) — check against pure-JAX reference.
    out_eval = position_encoding_forward(x, P, dropout_rate=DROPOUT, training=False)
    out_eval = jax.block_until_ready(out_eval)
    assert out_eval.shape == (B, S, D)
    assert jnp.allclose(out_eval, ref, atol=1e-6), "eval-mode mismatch"

    # Training-mode forward (stochastic dropout inside the kernel).
    out_train = position_encoding_forward(x, P, dropout_rate=DROPOUT, training=True,
                                          seed=42)
    out_train = jax.block_until_ready(out_train)
    assert out_train.shape == (B, S, D)
    assert bool(jnp.all(jnp.isfinite(out_train)))
    # Every output element is either dropped (0) or the scaled reference value.
    scale = 1.0 / (1.0 - DROPOUT)
    ok = jnp.logical_or(jnp.isclose(out_train, 0.0, atol=1e-6),
                        jnp.isclose(out_train, ref * scale, atol=1e-5))
    assert bool(jnp.all(ok)), "training-mode dropout values inconsistent"

    print("KERNEL_OK")
</pallas_src>

<mosaic_0001>
module attributes {stable_mosaic.version = 11 : i64} {
  func.func @_posenc_kernel(%arg0: i32, %arg1: i32, %arg2: memref<1xi32, #tpu.memory_space<smem>>, %arg3: memref<1x2x128xf32, #tpu.memory_space<vmem>>, %arg4: memref<2x128xf32, #tpu.memory_space<vmem>>, %arg5: memref<1x2x128xf32, #tpu.memory_space<vmem>>) attributes {dimension_semantics = [#tpu.dimension_semantics<parallel>, #tpu.dimension_semantics<parallel>], iteration_bounds = array<i64: 2, 1>, scalar_prefetch = 1 : i64, scratch_operands = 0 : i64, tpu.core_type = #tpu.core_type<tc>, window_params = [{transform_indices = @transform_0, window_bounds = array<i64: 1, 2, 128>}, {transform_indices = @transform_1, window_bounds = array<i64: 2, 128>}, {transform_indices = @transform_2, window_bounds = array<i64: 1, 2, 128>}]} {
    %c0 = arith.constant 0 : index
    %c0_0 = arith.constant 0 : index
    %c0_1 = arith.constant 0 : index
    %0 = vector.load %arg3[%c0, %c0_0, %c0_1] : memref<1x2x128xf32, #tpu.memory_space<vmem>>, vector<1x2x128xf32>
    %1 = vector.shape_cast %0 : vector<1x2x128xf32> to vector<2x128xf32>
    %c0_2 = arith.constant 0 : index
    %c0_3 = arith.constant 0 : index
    %2 = vector.load %arg4[%c0_2, %c0_3] : memref<2x128xf32, #tpu.memory_space<vmem>>, vector<2x128xf32>
    %3 = arith.addf %1, %2 : vector<2x128xf32>
    %c0_4 = arith.constant 0 : index
    %c0_5 = arith.constant 0 : index
    %c0_6 = arith.constant 0 : index
    %4 = vector.load %arg5[%c0_4, %c0_5, %c0_6] : memref<1x2x128xf32, #tpu.memory_space<vmem>>, vector<1x2x128xf32>
    %5 = vector.shape_cast %4 : vector<1x2x128xf32> to vector<2x128xf32>
    %6 = vector.shape_cast %3 : vector<2x128xf32> to vector<1x2x128xf32>
    tpu.vector_store %arg5[%c0_4, %c0_5, %c0_6], %6 {strides = array<i32>} : memref<1x2x128xf32, #tpu.memory_space<vmem>>, vector<1x2x128xf32>,
    return
  }
  func.func @transform_0(%arg0: i32, %arg1: i32, %arg2: memref<1xi32, #tpu.memory_space<smem>>) -> (i32, i32, i32) {
    %c0_i32 = arith.constant 0 : i32
    %c0_i32_0 = arith.constant 0 : i32
    return %arg0, %arg1, %c0_i32 : i32, i32, i32
  }
  func.func @transform_1(%arg0: i32, %arg1: i32, %arg2: memref<1xi32, #tpu.memory_space<smem>>) -> (i32, i32) {
    %c0_i32 = arith.constant 0 : i32
    %c0_i32_0 = arith.constant 0 : i32
    return %arg1, %c0_i32 : i32, i32
  }
  func.func @transform_2(%arg0: i32, %arg1: i32, %arg2: memref<1xi32, #tpu.memory_space<smem>>) -> (i32, i32, i32) {
    %c0_i32 = arith.constant 0 : i32
    %c0_i32_0 = arith.constant 0 : i32
    return %arg0, %arg1, %c0_i32 : i32, i32, i32
  }
}

</mosaic_0001>

<bundles_post_ra>
// kernel: tpu_custom_call.1
= control target key start
LH: loop header
LB: loop body
LE: loop exit
PB: predicated region body
PF: predicated region fallthrough
CT: control target
= control target key end

     0   :  { %9 = vsyncpa [#allocation5], 0  ;;  %s646_s0 = inlined_call_operand.<no memory space> [shape: s32[1], index: 0, kind: input, shape index: {}]   ;;  %s647_s1 = inlined_call_operand.hbm [shape: f32[2,2,128], index: 1, kind: input, shape index: {}]   ;;  %s648_s2 = inlined_call_operand.vmem [shape: f32[2,128], index: 2, kind: input, shape index: {}]   ;;  %s649_s3 = inlined_call_operand.hbm [shape: f32[2,2,128], index: 3, kind: output, shape index: {}]  }
   0x1   :  { %11 = vsyncpa [#allocation5 + $0x1], 0 }
   0x2   :  { %12 = vsyncpa [#allocation6], 0 }
   0x3   :  { %14 = vsyncpa [#allocation6 + $0x1], 0  ;;  %s523_s12 = smov 0   ;;  %s525_s13 = smov 0  }
   0x4   :  { %s527_s14 = smov 0   ;;  %s529_s0 = smov 0  }
   0x5   :  { %s531_s15 = smov 0   ;;  %s533_s16 = smov 0  }
   0x6 LB: > { %s313_s17 = sadd.s32 4294967295, %s501_s16   ;;  %s314_s18 = sadd.s32 4294967294, %s501_s16   ;;  %s501_s16 = sphi %s533_s16, %s20_s16   ;;  %s497_s15 = sphi %s531_s15, %s658_s15   ;;  %s493_s0 = sphi %s529_s0, %s657_s0   ;;  %s489_s14 = sphi %s527_s14, %s656_s14   ;;  %s485_s13 = sphi %s525_s13, %s655_s13   ;;  %s481_s12 = sphi %s523_s12, %s654_s12  }
   0x7   : > { %s32_s19 = sadd.s32 1, %s497_s15  ;;  %s41_s20 = sadd.s32 1, %s489_s14 }
   0x8   : > { %p34_p0 = scmp.ge.s32.totalorder %s32_s19, 2  ;;  %p48_p1 = scmp.ne.s32.totalorder %s489_s14, %s485_s13 }
   0x9   : > { %p49_p2 = scmp.eq.s32.totalorder %s501_s16, 0  ;;  %p54_p3 = scmp.ne.s32.totalorder %s485_s13, %s481_s12 }
   0xa   : > { %s660_s19 = smov (%p34_p0, %s32_s19), 0  ;;  %p55_p5 = scmp.eq.s32.totalorder %s313_s17, 0 }
   0xb   : > { %p564_p4 = por %p49_p2, %p48_p1  ;;  %s36_s22 = ssub.s32 %s497_s15, %s660_s19 }
   0xc   : > { %p106_p6 = scmp.eq.s32.totalorder %s313_s17, 1  ;;  %p39_p7 = scmp.eq.s32.totalorder %s36_s22, 0 }
   0xd   : > { %p570_p8 = por %p55_p5, %p54_p3  ;;  %p112_p10 = scmp.eq.s32.totalorder %s314_s18, 1 }
   0xe   : > { %p574_p9 = por %p106_p6, %p48_p1  ;;  %p317_p12 = scmp.ge.s32.totalorder %s501_s16, 2 }
   0xf   : > { %s579_s25 = scalar_select %p39_p7, %s489_s14, %s41_s20  }
  0x10   : > { %p581_p11 = por %p112_p10, %p54_p3  ;;  %p339_p13 = scmp.lt.s32.totalorder %s501_s16, 2 }
  0x11   : > { %s139_s27 = sand.u32 1, %s489_s14   ;;  %s319_s29 = sshll.u32 %s497_s15, 1 }
  0x12   : > { %s318_s28 = sshll.u32 %s139_s27, 1  ;;  %s148_s5 = scalar_lea.hbm %s647_s1, %s319_s29 }
  0x13   : > { %s143_s6 = scalar_lea.vmem [#allocation4], %s318_s28  ;;  %s150_s8 = sshll.u32 %s148_s5, 4  ;;  %s151_s8 = int_to_ptr.hbm [resolvable:$true] %s150_s8 }
  0x14   : > { %s152_s7 = sshll.u32 %s143_s6, 4  ;;  %p332_p0 = pnand %p339_p13, %p564_p4  ;;  %s153_s7 = int_to_ptr.vmem [resolvable:$true] %s152_s7 }
  0x15   : > { %p320_p1 = scmp.ge.s32.totalorder %s501_s16, 1  ;;  %p157_p2 = scmp.lt.s32.totalorder %s501_s16, 3 }
  0x16   : > { %s140_s9 = scalar_lea.sflag [#allocation5], %s139_s27 }
  0x17   : > { %334 = dma.hbm_to_vmem [thread:$0]  (!%p332_p0), %s151_s8, 32, %s153_s7, %s140_s9  }
  0x18   : > { %p158_p3 = pnand %p320_p1, %p157_p2 }
  0x19   : > { %s597_s10 = sand.u32 (!%p158_p3), 1, %s485_s13  }
  0x1a   : > { %161 = sbr.rel (%p158_p3) target bundleno = 47 (0x2f), region = 28  ;;  %s321_s11 = sshll.u32 (!%p158_p3), %s597_s10, 1 }
  0x1b   : > { %s164_s17 = scalar_lea.sflag (!%p158_p3), [#allocation5], %s597_s10  ;;  %s167_s18 = scalar_lea.vmem (!%p158_p3), [#allocation4], %s321_s11 }
  0x1f   : > { %472 = dma.done.wait (%p570_p8), %s164_s17, 32  }
  0x20   : > { %474 = vsyncadd (%p570_p8), %s164_s17, 4294967264  ;;  %s324_s20 = sshll.u32 %s493_s0, 1  ;;  %s192_s28 = scalar_lea.vmem [#allocation7], %s321_s11  ;;  %v197_v0 = vld [vmem:[%s167_s18] sm:$0x3] }
  0x21   : > { %s213_s27 = scalar_lea.hbm %s649_s3, %s324_s20  ;;  %s215_s29 = sshll.u32 %s192_s28, 4  ;;  %v198_v1 = vld [vmem:[%s648_s2] sm:$0x3]  ;;  %s216_s29 = int_to_ptr.vmem [resolvable:$true] %s215_s29 }
  0x22   : > { %s217_s30 = sshll.u32 %s213_s27, 4  ;;  %v199_v2 = vadd.f32 %v198_v1, %v197_v0  ;;  %s202_s23 = scalar_lea.sflag [#allocation6], %s597_s10  ;;  %s218_s30 = int_to_ptr.hbm [resolvable:$true] %s217_s30 }
  0x23   : > { %s433_s6 = sshra.s32 %s218_s30, 4  ;;  %s439_s9 = scalar_lea.hbm %s649_s3, 4  ;;  %s434_s6 = int_to_ptr.hbm [resolvable:$true] %s433_s6 }
  0x24   : > { %200 = vst [vmem:[%s192_s28] sm:$0x3] %v199_v2  ;;  %s435_s0 = scalar_lea.hbm %s434_s6, 2  ;;  %p440_p7 = scmp.lt.s32.totalorder %s434_s6, %s649_s3 }
  0x25   : > { %p436_p4 = scmp.ne.s32.totalorder %s434_s6, %s435_s0  ;;  %p441_p8 = scmp.lt.s32.totalorder %s439_s9, %s435_s0 }
  0x27   : > { %p437_p5 = pnand %p436_p4, %p574_p9  ;;  %p442_p10 = por %p441_p8, %p440_p7 }
  0x29   : > { %p438_p6 = pneg %p437_p5 }
  0x2b   : > { %p443_p13 = pnand %p442_p10, %p438_p6 }
  0x2d   : > { %446 = shalt.err (!%p443_p13)
}
  0x2e   : > { %329 = dma.vmem_to_hbm [thread:$0]  (%p574_p9), %s216_s29, 32, %s218_s30, %s202_s23  }
  0x2f PF: > { %s229_s10 = sand.u32 1, %s481_s12   ;;  %p336_p0 = pnand %p317_p12, %p581_p11 }
  0x30   : > { %s230_s18 = scalar_lea.sflag [#allocation6], %s229_s10 }
  0x31   : > { %p337_p1 = pneg %p336_p0 }
  0x33   : > { %476 = dma.done.wait (%p337_p1), %s230_s18, 32  }
  0x34   : > { %478 = vsyncadd (%p337_p1), %s230_s18, 4294967264  ;;  %s20_s16 = sadd.s32 1, %s501_s16   ;;  %s654_s12 = smov %s485_s13 }
  0x35   : > { %p17_p2 = scmp.ge.s32.totalorder %s20_s16, 4   ;;  %s655_s13 = smov %s489_s14 }
  0x36   : > { %s656_s14 = smov %s579_s25  ;;  %s657_s0 = smov %s497_s15 }
  0x37   : > { %s658_s15 = smov %s660_s19  ;;  %19 = sbr.rel (!%p17_p2) target bundleno = 6 (0x6), region = 76 }
  0x3c   :  { %236 = vsyncpa [#allocation5], 1 }
  0x3d   :  { %238 = vsyncpa [#allocation5 + $0x1], 1 }
  0x3e   :  { %239 = vsyncpa [#allocation6], 1 }
  0x3f   :  { %241 = vsyncpa [#allocation6 + $0x1], 1 }

</bundles_post_ra>
